<compile_context>
chip_gen: v7x
topology: tpu7x:2x2x1
jax: 0.10.0
libtpu: 0.0.40
codegen_flags: <defaults>
</compile_context>

<pallas_src>
import jax
import jax.numpy as jnp
from jax.experimental import pallas as pl
from jax.experimental.pallas import tpu as pltpu


def _unbind_sub_kernel(x_ref, o_ref):
    # x_ref is the whole (2, d1, d2) array in VMEM; unbind along dim 0 is two
    # static indexes, and the subtract is one VPU op.
    o_ref[...] = x_ref[0] - x_ref[1]


def unbind_sub(x):
    """Equivalent of: a, b = torch.unbind(x, 0); return a - b."""
    n, d1, d2 = x.shape
    assert n == 2, "module unpacks exactly two tensors from unbind(x, 0)"

    elem_bytes = jnp.dtype(x.dtype).itemsize
    return pl.pallas_call(
        _unbind_sub_kernel,
        out_shape=jax.ShapeDtypeStruct((d1, d2), x.dtype),
        # No grid: whole arrays resident in VMEM, no pipelining scaffolding.
        in_specs=[pl.BlockSpec(memory_space=pltpu.MemorySpace.VMEM)],
        out_specs=pl.BlockSpec(memory_space=pltpu.MemorySpace.VMEM),
        cost_estimate=pl.CostEstimate(
            flops=d1 * d2,
            transcendentals=0,
            bytes_accessed=(n + 1) * d1 * d2 * elem_bytes,  # read 2 planes, write 1
        ),
    )(x)


if __name__ == "__main__":
    key = jax.random.PRNGKey(0)
    # Shape from the module annotation: ([2, 3, 4], torch.float32).
    x = jax.random.normal(key, (2, 3, 4), dtype=jnp.float32)

    out = unbind_sub(x)
    out = jax.block_until_ready(out)

    # Reference of the PyTorch semantics in pure JAX.
    ref = x[0] - x[1]
    assert out.shape == (3, 4), out.shape
    assert jnp.allclose(out, ref, atol=0.0, rtol=0.0), "mismatch vs reference"

    print("KERNEL_OK")
</pallas_src>

<mosaic_0001>
module attributes {stable_mosaic.version = 11 : i64} {
  func.func @_unbind_sub_kernel(%arg0: memref<2x3x4xf32, #tpu.memory_space<vmem>>, %arg1: memref<3x4xf32, #tpu.memory_space<vmem>>) attributes {dimension_semantics = [], scalar_prefetch = 0 : i64, scratch_operands = 0 : i64, tpu.core_type = #tpu.core_type<tc>} {
    %c0 = arith.constant 0 : index
    %c0_0 = arith.constant 0 : index
    %c0_1 = arith.constant 0 : index
    %0 = vector.load %arg0[%c0, %c0_0, %c0_1] : memref<2x3x4xf32, #tpu.memory_space<vmem>>, vector<1x3x4xf32>
    %1 = vector.shape_cast %0 : vector<1x3x4xf32> to vector<3x4xf32>
    %c1 = arith.constant 1 : index
    %c0_2 = arith.constant 0 : index
    %c0_3 = arith.constant 0 : index
    %2 = vector.load %arg0[%c1, %c0_2, %c0_3] : memref<2x3x4xf32, #tpu.memory_space<vmem>>, vector<1x3x4xf32>
    %3 = vector.shape_cast %2 : vector<1x3x4xf32> to vector<3x4xf32>
    %4 = arith.subf %1, %3 : vector<3x4xf32>
    %c0_4 = arith.constant 0 : index
    %c0_5 = arith.constant 0 : index
    %5 = vector.load %arg1[%c0_4, %c0_5] : memref<3x4xf32, #tpu.memory_space<vmem>>, vector<3x4xf32>
    tpu.vector_store %arg1[%c0_4, %c0_5], %4 {strides = array<i32>} : memref<3x4xf32, #tpu.memory_space<vmem>>, vector<3x4xf32>,
    return
  }
}

</mosaic_0001>

<bundles_post_ra>
// kernel: tpu_custom_call.1
= control target key start
LH: loop header
LB: loop body
LE: loop exit
PB: predicated region body
PF: predicated region fallthrough
CT: control target
= control target key end

     0   :  { %vm13_vm0 = vcmask 26624   ;;  %s84_s0 = inlined_call_operand.vmem [shape: f32[2,3,4], index: 0, kind: input, shape index: {}]   ;;  %s85_s1 = inlined_call_operand.hbm [shape: f32[3,4], index: 1, kind: output, shape index: {}]  }
   0x1   :  { %v9_v0 = vld [vmem:[%s84_s0] sm:$0x7]  ;;  %v29_v1 = vld [vmem:[%s84_s0 + $0x4] sm:$0x7] }
   0x2   :  { %v12_v2 = vsub.f32 %v9_v0, %v29_v1 }
   0x3   :  { %6 = vsyncpa [#allocation3], 0  ;;  %s55_s10 = smov [#allocation2]  }
   0x4   :  { %s21_s11 = sshll.u32 %s55_s10, 4  ;;  %14 = vst.msk [vmem:[#allocation2] sm:$0x7] %vm13_vm0, %v12_v2  ;;  %s22_s11 = int_to_ptr.vmem [resolvable:$true] %s21_s11 }
   0x5   :  { %s31_s12 = scalar_lea.vmem %s22_s11, 64  ;;  %p36_p1 = scmp.lt.s32.totalorder %s22_s11, %s22_s11 }
   0x6   :  { %p32_p0 = scmp.ne.s32.totalorder %s22_s11, %s31_s12  ;;  %p37_p2 = scmp.lt.s32.totalorder %s31_s12, %s31_s12 }
   0x8   :  { %p38_p3 = por %p37_p2, %p36_p1 }
   0xa   :  { %p39_p4 = pnand %p38_p3, %p32_p0 }
   0xc   :  { %42 = shalt.err (!%p39_p4)
}
   0xd   :  { %s43_s15 = scalar_lea.hbm %s85_s1, 64 }
   0xe   :  { %p44_p5 = scmp.ne.s32.totalorder %s85_s1, %s43_s15  ;;  %p47_p6 = scmp.lt.u32.totalorder %s43_s15, %s85_s1 }
  0x10   :  { %p49_p7 = pnand %p47_p6, %p44_p5 }
  0x12   :  { %52 = shalt.err (!%p49_p7)
}
  0x13   :  { %24 = dma.vmem_to_hbm [thread:$0]  %s22_s11, 64, %s85_s1, [#allocation3]  }
  0x14   :  { %53 = dma.done.wait [#allocation3], 64  }
  0x15   :  { %54 = vsyncadd [#allocation3], 4294967232 }
  0x16   :  { %28 = vsyncpa [#allocation3], 1 }

</bundles_post_ra>
